<compile_context>
chip_gen: v6e
topology: v6e:2x2x1
jax: 0.10.0
libtpu: 0.0.40
codegen_flags: <defaults>
</compile_context>

<pallas_src>
import functools

import jax
import jax.numpy as jnp
from jax.experimental import pallas as pl
from jax.experimental.pallas import tpu as pltpu


_VMEM_BUDGET_BYTES = 40 * 1024 * 1024   # conservative: v7x has 64 MiB VMEM per TC
_MAX_TILE_P = 16384                     # lane columns per grid step


def _round_up(x, m):
    return -(-x // m) * m


def _matmul_kernel(w_ref, pt_ref, out_ref):
    # out[b] tile = weight (N, K) @ patches_T[b] tile (K, tile_p).
    # Single K block (K = n_comp), so no accumulation loop; accumulate in f32.
    out_ref[0, :, :] = jnp.dot(
        w_ref[...], pt_ref[0, :, :], preferred_element_type=jnp.float32
    ).astype(out_ref.dtype)


def _pick_tile_p(p_cols, batch, k, n, in_bytes, out_bytes):
    """Largest lane tile that (a) keeps the double-buffered pipeline within the
    VMEM budget, (b) still yields a few grid steps when the batch axis alone
    cannot feed the pipeline / both v7x TensorCores, and (c) is a multiple of
    128 lanes unless it covers the full extent."""
    per_col = 2 * (k * in_bytes + n * out_bytes)        # 2x: double buffering
    resident = 2 * n * k * in_bytes                     # weight stays resident
    cap = max(128, (_VMEM_BUDGET_BYTES - resident) // per_col)
    tile = min(p_cols, _MAX_TILE_P, int(cap))
    # If B alone gives too few grid steps, split P as well -- but keep >= 2048
    # lanes per step so the ~0.35us per-grid-step overhead stays amortized.
    min_steps = 4
    if batch < min_steps and p_cols >= 4096:
        want_p_steps = pl.cdiv(min_steps, batch)
        tile = min(tile, max(2048, _round_up(pl.cdiv(p_cols, want_p_steps), 128)))
    if tile < p_cols:
        tile = max(128, (tile // 128) * 128)            # lane-dense blocks
    else:
        tile = p_cols                                   # full extent (always legal)
    return int(tile)


def _pallas_batched_matmul(weight, patches_t):
    """weight: (N, K), patches_t: (B, K, P) -> (B, N, P) float32 (NCHW-flat)."""
    n, k = weight.shape
    b, k2, p = patches_t.shape
    assert k == k2

    in_b = jnp.dtype(patches_t.dtype).itemsize
    out_b = 4  # float32 output

    tile_p = _pick_tile_p(p, b, k, n, in_b, out_b)
    grid_p = pl.cdiv(p, tile_p)

    footprint = 2 * n * k * in_b + 2 * tile_p * (k * in_b + n * out_b)
    # Explicit limit: v5e's default scoped-VMEM limit is only 16 MiB; stay well
    # below v7x's 64 MiB physical VMEM.
    vmem_limit = int(min(56 * 1024 * 1024,
                         max(footprint + 8 * 1024 * 1024, 24 * 1024 * 1024)))

    return pl.pallas_call(
        _matmul_kernel,
        out_shape=jax.ShapeDtypeStruct((b, n, p), jnp.float32),
        grid_spec=pltpu.PrefetchScalarGridSpec(
            num_scalar_prefetch=0,
            grid=(b, grid_p),
            in_specs=[
                # Weight is fetched once and stays VMEM-resident (constant index map).
                pl.BlockSpec((n, k), lambda bi, pi: (0, 0)),
                # Ragged last P block is masked by Pallas; no jnp.pad copy needed.
                pl.BlockSpec((1, k, tile_p), lambda bi, pi: (bi, 0, pi)),
            ],
            out_specs=pl.BlockSpec((1, n, tile_p), lambda bi, pi: (bi, 0, pi)),
        ),
        compiler_params=pltpu.CompilerParams(
            dimension_semantics=("parallel", "parallel"),
            vmem_limit_bytes=vmem_limit,
        ),
    )(weight, patches_t)


def _im2col_kmajor(x, filter_size, stride):
    """x: (B, C, H, W) -> patches_T (B, C*f*f, H_out*W_out).

    Row order (c, kh, kw) matches weight.view(n_comp, C, f, f) row-major
    flattening; column order (i, j) matches the NCHW spatial raster, so
    weight @ patches_T is already the NCHW output (flattened spatially)."""
    B, C, H, W = x.shape
    f, s = filter_size, stride
    H_out = (H - f) // s + 1
    W_out = (W - f) // s + 1

    if f == 1:
        # 1x1 kernel: pure reshape (stride 1) or strided slice -- no transpose.
        xs = x if s == 1 else x[:, :, ::s, ::s]
        return xs.reshape(B, C, H_out * W_out), H_out, W_out

    if s == f:
        # Space-to-depth: free 6-D reshape + a single transpose (one HBM pass).
        xs = x
        if H_out * f != H or W_out * f != W:
            xs = x[:, :, : H_out * f, : W_out * f]
        x6 = xs.reshape(B, C, H_out, f, W_out, f)
        pt = jnp.transpose(x6, (0, 1, 3, 5, 2, 4))          # (B, C, f, f, Ho, Wo)
        return pt.reshape(B, C * f * f, H_out * W_out), H_out, W_out

    # General stride: gather the f*f shifted slabs.
    slabs = []
    for kh in range(f):
        for kw in range(f):
            slabs.append(x[:, :, kh : kh + s * H_out : s, kw : kw + s * W_out : s])
    stk = jnp.stack(slabs, axis=0).reshape(f, f, B, C, H_out, W_out)
    stk = jnp.transpose(stk, (2, 3, 0, 1, 4, 5))            # (B, C, f, f, Ho, Wo)
    return stk.reshape(B, C * f * f, H_out * W_out), H_out, W_out


@functools.partial(jax.jit, static_argnames=("filter_size", "stride", "compute_dtype"))
def so_layer2d_forward(x, weight, *, filter_size, stride, compute_dtype=None):
    """Pallas implementation of SO_Layer2d.forward.

    Args:
      x:             (B, C, H, W) float32 (NCHW, as in PyTorch).
      weight:        (n_comp, n_comp) float32 with n_comp = C*f*f.
      compute_dtype: optional matmul input dtype (e.g. jnp.bfloat16) to halve the
                     hot matmul's HBM read bytes; accumulation stays float32.
    Returns:
      (B, n_comp, H_out, W_out) float32 (NCHW, matching the PyTorch module).
    """
    B, C, H, W = x.shape
    f, s = filter_size, stride
    n_comp = C * f * f
    assert weight.shape == (n_comp, n_comp)

    patches_t, H_out, W_out = _im2col_kmajor(x, f, s)       # (B, K, P)
    w = weight
    if compute_dtype is not None:
        patches_t = patches_t.astype(compute_dtype)
        w = w.astype(compute_dtype)

    out = _pallas_batched_matmul(w, patches_t)               # (B, n_comp, P) f32
    return out.reshape(B, n_comp, H_out, W_out)              # free reshape: NCHW


def make_so_weight(in_channels, filter_size, key):
    """Deterministic stand-in for SO_Layer2d.reset_():
    Q from QR of Normal(0, 0.01) samples, shape (n_comp, n_comp)."""
    n_comp = in_channels * filter_size * filter_size
    g = 0.01 * jax.random.normal(key, (n_comp, n_comp), dtype=jnp.float32)
    q, _ = jnp.linalg.qr(g)
    return q


if __name__ == "__main__":
    # Small shapes consistent with the module: B=2, C=4, H=W=16, filter=2, stride=2.
    B, C, H, W = 2, 4, 16, 16
    filter_size, stride = 2, 2

    key = jax.random.PRNGKey(0)
    kx, kw = jax.random.split(key)
    x = jax.random.normal(kx, (B, C, H, W), dtype=jnp.float32)
    weight = make_so_weight(C, filter_size, kw)               # (16, 16) orthogonal

    out = so_layer2d_forward(x, weight, filter_size=filter_size, stride=stride)
    out = jax.block_until_ready(out)

    # Sanity check against XLA's conv (same semantics as F.conv2d, no padding).
    n_comp = C * filter_size * filter_size
    kernel = weight.reshape(n_comp, C, filter_size, filter_size)

    def conv_ref(xx, kk, s):
        return jax.lax.conv_general_dilated(
            xx, kk, window_strides=(s, s), padding="VALID",
            dimension_numbers=("NCHW", "OIHW", "NCHW"))

    ref = conv_ref(x, kernel, stride)
    assert out.shape == ref.shape, (out.shape, ref.shape)
    assert jnp.allclose(out, ref, atol=1e-4, rtol=1e-4)

    # Also exercise the general-stride (overlapping windows) path.
    out1 = jax.block_until_ready(
        so_layer2d_forward(x, weight, filter_size=filter_size, stride=1))
    ref1 = conv_ref(x, kernel, 1)
    assert out1.shape == ref1.shape, (out1.shape, ref1.shape)
    assert jnp.allclose(out1, ref1, atol=1e-4, rtol=1e-4)

    print("KERNEL_OK")
</pallas_src>

<mosaic_0001>
module attributes {stable_mosaic.version = 11 : i64} {
  func.func @_matmul_kernel(%arg0: i32, %arg1: i32, %arg2: memref<16x16xf32, #tpu.memory_space<vmem>>, %arg3: memref<1x16x64xf32, #tpu.memory_space<vmem>>, %arg4: memref<1x16x64xf32, #tpu.memory_space<vmem>>) attributes {dimension_semantics = [#tpu.dimension_semantics<parallel>, #tpu.dimension_semantics<parallel>], iteration_bounds = array<i64: 2, 1>, scalar_prefetch = 0 : i64, scratch_operands = 0 : i64, tpu.core_type = #tpu.core_type<tc>, window_params = [{pipeline_mode = #tpu.pipeline_mode<synchronous>, transform_indices = @transform_0, window_bounds = array<i64: 16, 16>}, {transform_indices = @transform_1, window_bounds = array<i64: 1, 16, 64>}, {transform_indices = @transform_2, window_bounds = array<i64: 1, 16, 64>}]} {
    %c0 = arith.constant 0 : index
    %c0_0 = arith.constant 0 : index
    %0 = vector.load %arg2[%c0, %c0_0] : memref<16x16xf32, #tpu.memory_space<vmem>>, vector<16x16xf32>
    %c0_1 = arith.constant 0 : index
    %c0_2 = arith.constant 0 : index
    %c0_3 = arith.constant 0 : index
    %1 = vector.load %arg3[%c0_1, %c0_2, %c0_3] : memref<1x16x64xf32, #tpu.memory_space<vmem>>, vector<1x16x64xf32>
    %2 = vector.shape_cast %1 : vector<1x16x64xf32> to vector<16x64xf32>
    %cst = arith.constant dense<0.000000e+00> : vector<16x64xf32>
    %3 = tpu.matmul %0, %2, %cst {dimension_numbers = #tpu.dot_dimension_numbers<[1], [0], [0], [1], [0, 0, 1, 1], [], []>} : vector<16x16xf32>, vector<16x64xf32>, vector<16x64xf32> -> vector<16x64xf32>
    %c0_4 = arith.constant 0 : index
    %c0_5 = arith.constant 0 : index
    %c0_6 = arith.constant 0 : index
    %4 = vector.load %arg4[%c0_4, %c0_5, %c0_6] : memref<1x16x64xf32, #tpu.memory_space<vmem>>, vector<1x16x64xf32>
    %5 = vector.shape_cast %4 : vector<1x16x64xf32> to vector<16x64xf32>
    %6 = vector.shape_cast %3 : vector<16x64xf32> to vector<1x16x64xf32>
    tpu.vector_store %arg4[%c0_4, %c0_5, %c0_6], %6 {strides = array<i32>} : memref<1x16x64xf32, #tpu.memory_space<vmem>>, vector<1x16x64xf32>,
    return
  }
  func.func @transform_0(%arg0: i32, %arg1: i32) -> (i32, i32) {
    %c0_i32 = arith.constant 0 : i32
    %c0_i32_0 = arith.constant 0 : i32
    %c0_i32_1 = arith.constant 0 : i32
    return %c0_i32, %c0_i32_0 : i32, i32
  }
  func.func @transform_1(%arg0: i32, %arg1: i32) -> (i32, i32, i32) {
    %c0_i32 = arith.constant 0 : i32
    %c0_i32_0 = arith.constant 0 : i32
    return %arg0, %c0_i32, %arg1 : i32, i32, i32
  }
  func.func @transform_2(%arg0: i32, %arg1: i32) -> (i32, i32, i32) {
    %c0_i32 = arith.constant 0 : i32
    %c0_i32_0 = arith.constant 0 : i32
    return %arg0, %c0_i32, %arg1 : i32, i32, i32
  }
}

</mosaic_0001>

<bundles_post_ra>
// kernel: so_layer2d_forward.1
= control target key start
LH: loop header
LB: loop body
LE: loop exit
PB: predicated region body
PF: predicated region fallthrough
CT: control target
= control target key end

     0   :  { %s436_s9 = smov 0   ;;  %s438_s10 = smov 0   ;;  %s472_s0 = inlined_call_operand.vmem [shape: f32[16,16], index: 0, kind: input, shape index: {}]   ;;  %s473_s1 = inlined_call_operand.vmem [shape: f32[2,16,64], index: 1, kind: input, shape index: {}]   ;;  %s474_s2 = inlined_call_operand.vmem [shape: f32[2,16,64], index: 2, kind: output, shape index: {}]  }
   0x1   :  { %s440_s11 = smov 0  }
   0x2 LB: > { %s24_s12 = sadd.s32 1, %s415_s10  ;;  %p351_p0 = scmp.ge.s32.totalorder %s419_s11, 1  ;;  %s419_s11 = sphi %s440_s11, %s12_s11   ;;  %s415_s10 = sphi %s438_s10, %s476_s10   ;;  %s411_s9 = sphi %s436_s9, %s475_s9  }
   0x3   : > { %p26_p1 = scmp.ge.s32.totalorder %s24_s12, 2  ;;  %p131_p2 = scmp.lt.s32.totalorder %s419_s11, 3 }
   0x5   : > { %s478_s12 = smov (%p26_p1, %s24_s12), 0  ;;  %p132_p3 = pnand %p351_p0, %p131_p2 }
   0x6   : > { %p159_p4 = scmp.lt.s32.totalorder (!%p132_p3), %s411_s9, 1 }
   0x7   : > { %135 = sbr.rel (%p132_p3) target bundleno = 216 (0xd8), region = 28 }
   0xc   : > { %v175_v0 = vld [vmem:[%s472_s0] sm:$0xff]  ;;  %vm179_vm0 = vcmask 130048   ;;  %s480_s9 = smov (!%p159_p4, %s411_s9), 1  ;;  %v176_v3 = vld [vmem:[%s472_s0 + $0x8] sm:$0xff]  ;;  %vm261_vm1 = vcmask 523264  }
   0xd   : > { %370 = vmatprep.mubr.msk.f32.mxu0 %vm179_vm0, %v175_v0  ;;  %s360_s15 = sshll.u32 %s480_s9, 4 }
   0xe   : > { %s166_s18 = scalar_lea.vmem %s473_s1, %s360_s15  ;;  %s174_s23 = scalar_lea.vmem %s474_s2, %s360_s15 }
   0xf   : > { %v178_v1 = vld [vmem:[%s166_s18 + $0x8] sm:$0xff]  ;;  %v177_v2 = vld [vmem:[%s166_s18] sm:$0xff] }
  0x10   : > { %366 = vmatprep.subr.mxu0 %v178_v1 }
  0x11   : > { %367 = vmatpush3.msra.mxu0 %v178_v1 }
  0x12   : > { %368 = vmatprep.subr.mxu0 %v177_v2 }
  0x13   : > { %369 = vmatpush3.msra.mxu0 %v177_v2 }
  0x14   : > { %371 = vmatmul.mubr.msk.f32.vlgmr.msra.gmra.mxu0 %vm179_vm0, %v176_v3 }
  0xd4   : > { %v372_v4 = vpop.f32.mrf.mxu0 }
  0xd5   : > { %263 = vst.msk [vmem:[%s174_s23 + $0x8] sm:$0xff] %vm261_vm1, %v372_v4 }
  0xd6   : > { %v252_v5 = vpop.f32.mrf.mxu0 }
  0xd7   : > { %262 = vst.msk [vmem:[%s174_s23] sm:$0xff] %vm261_vm1, %v252_v5 }
  0xd8 PF: > { %s12_s11 = sadd.s32 1, %s419_s11   ;;  %s475_s9 = smov %s415_s10 }
  0xd9   : > { %p9_p5 = scmp.ge.s32.totalorder %s12_s11, 4   ;;  %s476_s10 = smov %s478_s12 }
  0xdb   :  { %11 = sbr.rel (!%p9_p5) target bundleno = 2 (0x2), region = 58 }

</bundles_post_ra>
